<compile_context>
chip_gen: v6e
topology: v6e:2x2x1
jax: 0.10.0
libtpu: 0.0.40
codegen_flags: <defaults>
</compile_context>

<pallas_src>
import functools
import math

import jax
import jax.numpy as jnp
from jax.experimental import pallas as pl
from jax.experimental.pallas import tpu as pltpu


def _param_embed_kernel(params_ref, w_t_ref, o_ref, *, batch, target_dim,
                        store_chunk_b):
    # params_ref: (TP, B) f32   w_t_ref: (TP, D) f32   o_ref: (TP, B*D) f32
    p = params_ref[...]                       # (TP, B)
    w = w_t_ref[...]                          # (TP, D)
    # out[tp, b*D + d] = p[tp, b] * w[tp, d]
    # Build `store_chunk_b` batches of output at a time so each store writes a
    # full-width, 128-lane-aligned slab (chunk width = store_chunk_b * D is a
    # multiple of 128 except possibly a ragged tail).  The broadcast multiplies
    # and the concat run on VPU/XLU slots, which are idle here; the vst slot
    # (the binding slot for this store-bound kernel) stays at full throughput.
    # TODO(synk): for very large batch*target_dim, replace this static unroll
    # with a lax.fori_loop over chunks (pl.ds + pl.multiple_of) or a second
    # batch grid axis to bound trace size and register live ranges.
    for b0 in range(0, batch, store_chunk_b):
        nb = min(store_chunk_b, batch - b0)
        parts = [w * p[:, b:b + 1] for b in range(b0, b0 + nb)]
        chunk = parts[0] if nb == 1 else jnp.concatenate(parts, axis=1)
        o_ref[:, b0 * target_dim:(b0 + nb) * target_dim] = chunk


def _vmem_budgets():
    """Generation-aware (per-buffer tile budget, vmem_limit_bytes).

    v7x has 64 MiB VMEM/TC -> 8 MiB tiles, 32 MiB limit.
    v5e/v6e have 128 MiB   -> 16 MiB tiles, 64 MiB limit (lifts v5e's 16 MiB
    scoped default and uses v6e's headroom for fewer, larger grid steps).
    """
    try:
        cap = pltpu.get_tpu_info().vmem_capacity_bytes
    except Exception:
        cap = 64 * 1024 * 1024            # conservative: assume v7x-sized VMEM
    vmem_limit = min(cap // 2, 64 * 1024 * 1024)
    per_buffer = min(cap // 8, 16 * 1024 * 1024)
    return per_buffer, vmem_limit


def _pick_block_params(n_params, batch, target_dim, per_buffer_budget,
                       itemsize=4, min_grid_steps=2):
    """Pick the param-tile size.

    Largest sublane-aligned (multiple of 8) tile that (a) fits the per-buffer
    VMEM budget so double-buffered pipelining stays alive, and (b) leaves the
    grid with >= min_grid_steps steps so the "parallel" axis can shard across
    both TensorCores on v7x.  Pallas masks the ragged last block, so the tile
    does not need to divide n_params (fixes the old over-budget fallback).
    """
    row_bytes = (batch * target_dim + batch + target_dim) * itemsize
    budget_rows = max(per_buffer_budget // max(row_bytes, 1), 8)
    core_rows = max(pl.cdiv(n_params, min_grid_steps), 8)
    tp = min(n_params, budget_rows, core_rows)
    if tp < n_params:
        tp = max((tp // 8) * 8, 8)        # sublane-aligned; ragged tail is OK
    return tp


def simple_param_embedding(params, n_param_to_target, *, block_params=None,
                           force_kernel=False):
    """params: (n_params, batch) f32; n_param_to_target: (target_dim, n_params).

    Returns (n_params, batch, target_dim), matching the PyTorch module.
    """
    n_params, batch = params.shape
    target_dim, n_params_w = n_param_to_target.shape
    assert n_params_w == n_params

    # Tiny (D, P) weight: one wrapper-side transpose -> (P, D) tile layout.
    w_t = jnp.transpose(n_param_to_target)

    out_bytes = n_params * batch * target_dim * params.dtype.itemsize
    if (not force_kernel) and block_params is None and out_bytes < (1 << 20):
        # Tiny problem: pallas_call launch + per-step overhead dominates; a
        # fused XLA broadcast multiply wins on every TPU generation.
        return params[:, :, None] * w_t[:, None, :]

    per_buffer_budget, vmem_limit = _vmem_budgets()
    tp = block_params if block_params is not None else _pick_block_params(
        n_params, batch, target_dim, per_buffer_budget,
        itemsize=params.dtype.itemsize)
    grid = (pl.cdiv(n_params, tp),)
    flat_cols = batch * target_dim

    # Store-chunk granularity: number of batches per in-kernel store such that
    # the store width is a multiple of 128 lanes (fully dense, unmasked vst).
    if target_dim % 128 == 0:
        store_chunk_b = 1                           # each batch is already dense
    else:
        align_b = 128 // math.gcd(target_dim, 128)  # smallest lane-aligned group
        store_chunk_b = min(batch, align_b)

    kernel = functools.partial(_param_embed_kernel, batch=batch,
                               target_dim=target_dim,
                               store_chunk_b=store_chunk_b)

    out2d = pl.pallas_call(
        kernel,
        out_shape=jax.ShapeDtypeStruct((n_params, flat_cols), params.dtype),
        grid=grid,
        in_specs=[
            pl.BlockSpec((tp, batch), lambda i: (i, 0)),
            pl.BlockSpec((tp, target_dim), lambda i: (i, 0)),
        ],
        out_specs=pl.BlockSpec((tp, flat_cols), lambda i: (i, 0)),
        compiler_params=pltpu.CompilerParams(
            dimension_semantics=("parallel",),      # independent param tiles
            vmem_limit_bytes=vmem_limit,
        ),
        cost_estimate=pl.CostEstimate(
            flops=n_params * batch * target_dim,
            transcendentals=0,
            bytes_accessed=int(params.dtype.itemsize) * (
                n_params * batch + n_params * target_dim
                + n_params * batch * target_dim),
        ),
    )(params, w_t)

    # Metadata-only reshape back to the PyTorch (n_params, batch, target_dim).
    return out2d.reshape(n_params, batch, target_dim)


if __name__ == "__main__":
    n_params, batch, target_dim = 16, 8, 32

    key = jax.random.PRNGKey(0)
    k_params, k_w, k_iw = jax.random.split(key, 3)

    params = jax.random.normal(k_params, (n_params, batch), dtype=jnp.float32)
    n_param_to_target = jax.random.normal(k_w, (target_dim, n_params),
                                          dtype=jnp.float32)
    # Present on the module but never read by forward(); created for parity.
    interaction_weights = jax.random.normal(k_iw, (n_params, n_params),
                                            dtype=jnp.float32)

    expected = params[:, :, None] * jnp.transpose(n_param_to_target)[:, None, :]

    # Pallas kernel, auto tile picker (-> 2 "parallel" grid steps of 8 rows,
    # exercising the multi-block megacore-friendly path).
    out_kernel = jax.block_until_ready(
        simple_param_embedding(params, n_param_to_target, force_kernel=True))
    # Pallas kernel, explicit single-block tiling.
    out_single = jax.block_until_ready(
        simple_param_embedding(params, n_param_to_target, block_params=16,
                               force_kernel=True))
    # Default auto path: tiny problem -> plain-XLA early-out.
    out_auto = jax.block_until_ready(
        simple_param_embedding(params, n_param_to_target))

    for out in (out_kernel, out_single, out_auto):
        assert out.shape == (n_params, batch, target_dim)
        assert out.dtype == jnp.float32
        assert jnp.allclose(out, expected, atol=1e-6, rtol=1e-6)

    print("KERNEL_OK")
</pallas_src>

<mosaic_0001>
module attributes {stable_mosaic.version = 11 : i64} {
  func.func @_param_embed_kernel(%arg0: i32, %arg1: memref<8x8xf32, #tpu.memory_space<vmem>>, %arg2: memref<8x32xf32, #tpu.memory_space<vmem>>, %arg3: memref<8x256xf32, #tpu.memory_space<vmem>>) attributes {dimension_semantics = [#tpu.dimension_semantics<parallel>], iteration_bounds = array<i64: 2>, scalar_prefetch = 0 : i64, scratch_operands = 0 : i64, tpu.core_type = #tpu.core_type<tc>, window_params = [{transform_indices = @transform_0, window_bounds = array<i64: 8, 8>}, {transform_indices = @transform_1, window_bounds = array<i64: 8, 32>}, {transform_indices = @transform_2, window_bounds = array<i64: 8, 256>}]} {
    %c0 = arith.constant 0 : index
    %c0_0 = arith.constant 0 : index
    %0 = vector.load %arg1[%c0, %c0_0] : memref<8x8xf32, #tpu.memory_space<vmem>>, vector<8x8xf32>
    %c0_1 = arith.constant 0 : index
    %c0_2 = arith.constant 0 : index
    %1 = vector.load %arg2[%c0_1, %c0_2] : memref<8x32xf32, #tpu.memory_space<vmem>>, vector<8x32xf32>
    %2 = vector.extract_strided_slice %0 {offsets = [0, 0], sizes = [8, 1], strides = [1, 1]} : vector<8x8xf32> to vector<8x1xf32>
    %3 = vector.broadcast %2 : vector<8x1xf32> to vector<8x32xf32>
    %4 = arith.mulf %1, %3 : vector<8x32xf32>
    %5 = vector.extract_strided_slice %0 {offsets = [0, 1], sizes = [8, 1], strides = [1, 1]} : vector<8x8xf32> to vector<8x1xf32>
    %6 = vector.broadcast %5 : vector<8x1xf32> to vector<8x32xf32>
    %7 = arith.mulf %1, %6 : vector<8x32xf32>
    %8 = vector.extract_strided_slice %0 {offsets = [0, 2], sizes = [8, 1], strides = [1, 1]} : vector<8x8xf32> to vector<8x1xf32>
    %9 = vector.broadcast %8 : vector<8x1xf32> to vector<8x32xf32>
    %10 = arith.mulf %1, %9 : vector<8x32xf32>
    %11 = vector.extract_strided_slice %0 {offsets = [0, 3], sizes = [8, 1], strides = [1, 1]} : vector<8x8xf32> to vector<8x1xf32>
    %12 = vector.broadcast %11 : vector<8x1xf32> to vector<8x32xf32>
    %13 = arith.mulf %1, %12 : vector<8x32xf32>
    %14 = tpu.concatenate %4, %7, %10, %13 in 1 : vector<8x32xf32>, vector<8x32xf32>, vector<8x32xf32>, vector<8x32xf32> -> vector<8x128xf32>
    %c0_3 = arith.constant 0 : index
    %c0_4 = arith.constant 0 : index
    %15 = vector.load %arg3[%c0_3, %c0_4] : memref<8x256xf32, #tpu.memory_space<vmem>>, vector<8x128xf32>
    tpu.vector_store %arg3[%c0_3, %c0_4], %14 {strides = array<i32>} : memref<8x256xf32, #tpu.memory_space<vmem>>, vector<8x128xf32>,
    %16 = vector.extract_strided_slice %0 {offsets = [0, 4], sizes = [8, 1], strides = [1, 1]} : vector<8x8xf32> to vector<8x1xf32>
    %17 = vector.broadcast %16 : vector<8x1xf32> to vector<8x32xf32>
    %18 = arith.mulf %1, %17 : vector<8x32xf32>
    %19 = vector.extract_strided_slice %0 {offsets = [0, 5], sizes = [8, 1], strides = [1, 1]} : vector<8x8xf32> to vector<8x1xf32>
    %20 = vector.broadcast %19 : vector<8x1xf32> to vector<8x32xf32>
    %21 = arith.mulf %1, %20 : vector<8x32xf32>
    %22 = vector.extract_strided_slice %0 {offsets = [0, 6], sizes = [8, 1], strides = [1, 1]} : vector<8x8xf32> to vector<8x1xf32>
    %23 = vector.broadcast %22 : vector<8x1xf32> to vector<8x32xf32>
    %24 = arith.mulf %1, %23 : vector<8x32xf32>
    %25 = vector.extract_strided_slice %0 {offsets = [0, 7], sizes = [8, 1], strides = [1, 1]} : vector<8x8xf32> to vector<8x1xf32>
    %26 = vector.broadcast %25 : vector<8x1xf32> to vector<8x32xf32>
    %27 = arith.mulf %1, %26 : vector<8x32xf32>
    %28 = tpu.concatenate %18, %21, %24, %27 in 1 : vector<8x32xf32>, vector<8x32xf32>, vector<8x32xf32>, vector<8x32xf32> -> vector<8x128xf32>
    %c0_5 = arith.constant 0 : index
    %c128 = arith.constant 128 : index
    %29 = vector.load %arg3[%c0_5, %c128] : memref<8x256xf32, #tpu.memory_space<vmem>>, vector<8x128xf32>
    tpu.vector_store %arg3[%c0_5, %c128], %28 {strides = array<i32>} : memref<8x256xf32, #tpu.memory_space<vmem>>, vector<8x128xf32>,
    return
  }
  func.func @transform_0(%arg0: i32) -> (i32, i32) {
    %c0_i32 = arith.constant 0 : i32
    %c0_i32_0 = arith.constant 0 : i32
    return %arg0, %c0_i32 : i32, i32
  }
  func.func @transform_1(%arg0: i32) -> (i32, i32) {
    %c0_i32 = arith.constant 0 : i32
    %c0_i32_0 = arith.constant 0 : i32
    return %arg0, %c0_i32 : i32, i32
  }
  func.func @transform_2(%arg0: i32) -> (i32, i32) {
    %c0_i32 = arith.constant 0 : i32
    %c0_i32_0 = arith.constant 0 : i32
    return %arg0, %c0_i32 : i32, i32
  }
}

</mosaic_0001>

<bundles_post_ra>
// kernel: tpu_custom_call.1
= control target key start
LH: loop header
LB: loop body
LE: loop exit
PB: predicated region body
PF: predicated region fallthrough
CT: control target
= control target key end

     0   :  { %7 = vsyncpa [#allocation3], 0  ;;  %s578_s0 = inlined_call_operand.vmem [shape: f32[16,8], index: 0, kind: input, shape index: {}]   ;;  %s579_s1 = inlined_call_operand.vmem [shape: f32[16,32], index: 1, kind: input, shape index: {}]   ;;  %s580_s2 = inlined_call_operand.hbm [shape: f32[16,256], index: 2, kind: output, shape index: {}]  }
   0x1   :  { %9 = vsyncpa [#allocation3 + $0x1], 0  ;;  %s480_s9 = smov 0   ;;  %s482_s10 = smov 0  }
   0x2   :  { %s484_s11 = smov 0   ;;  %s486_s12 = smov 0  }
   0x3 LB: > { %s501_s13 = sadd.s32 4294967295, %s451_s12   ;;  %s320_s14 = sadd.s32 4294967294, %s451_s12   ;;  %s451_s12 = sphi %s486_s12, %s586_s12   ;;  %s447_s11 = sphi %s484_s11, %s585_s11   ;;  %s443_s10 = sphi %s482_s10, %s584_s10   ;;  %s439_s9 = sphi %s480_s9, %s583_s9  }
   0x4   : > { %s505_s15 = sadd.s32 1, %s451_s12   ;;  %s74_s16 = sadd.s32 1, %s447_s11 }
   0x5   : > { %s71_s17 = ssub.s32 %s451_s12, %s505_s15  ;;  %p84_p0 = scmp.ne.s32.totalorder %s447_s11, %s443_s10 }
   0x6   : > { %p72_p1 = scmp.eq.s32.totalorder %s71_s17, 0  ;;  %p85_p2 = scmp.eq.s32.totalorder %s501_s13, 1 }
   0x7   : > { %p90_p3 = scmp.ne.s32.totalorder %s443_s10, %s439_s9  ;;  %p91_p4 = scmp.eq.s32.totalorder %s320_s14, 1 }
   0x8   : > { %s516_s18 = scalar_select %p72_p1, %s447_s11, %s74_s16  }
   0x9   : > { %p518_p5 = por %p85_p2, %p84_p0  ;;  %p522_p6 = por %p91_p4, %p90_p3 }
   0xa   : > { %p323_p7 = scmp.ge.s32.totalorder %s451_s12, 1  ;;  %p123_p8 = scmp.lt.s32.totalorder %s451_s12, 3 }
   0xc   : > { %p124_p9 = pnand %p323_p7, %p123_p8 }
   0xd   : > { %p148_p10 = scmp.lt.s32.totalorder (!%p124_p9), %s501_s13, 1  ;;  %s461_s29 = smov (!%p124_p9), 32  }
   0xe   : > { %127 = sbr.rel (%p124_p9) target bundleno = 292 (0x124), region = 28  ;;  %s462_s30 = smov (!%p124_p9), 64  }
   0xf   : > { %s463_s3 = smov (!%p124_p9), 96   ;;  %s145_s4 = sand.u32 (!%p124_p9), 1, %s443_s10  }
  0x10   : > { %s324_s5 = sshll.u32 (!%p124_p9), %s145_s4, 4  ;;  %s332_s6 = sshll.u32 (!%p124_p9), %s501_s13, 8 }
  0x11   : > { %s147_s7 = scalar_lea.vmem (!%p124_p9), [#allocation2], %s324_s5  ;;  %s542_s17 = scalar_lea.hbm (!%p124_p9), %s580_s2, %s332_s6 }
  0x12   : > { %s249_s8 = sshll.u32 (!%p124_p9), %s147_s7, 4  ;;  %s250_s8 = int_to_ptr.vmem [resolvable:$true] %s249_s8 }
  0x13   : > { %v453_v0 = vmov 2   ;;  %v454_v1 = vmov 1   ;;  %s149_s21 = scalar_select %p148_p10, %s501_s13, 1  ;;  %v455_v3 = vmov 6   ;;  %v456_v4 = vmov 5  }
  0x14   : > { %385 = vset.pattern.permute.xlu1 %v453_v0  ;;  %383 = vset.pattern.permute.xlu0 %v454_v1  ;;  %v457_v5 = vmov 3   ;;  %v458_v6 = vmov 7   ;;  %v459_v7 = vmov 0   ;;  %v460_v8 = vmov 4   ;;  %s464_s13 = smov [#allocation2]  }
  0x15   : > { %s325_s22 = sshll.u32 %s149_s21, 3  ;;  %vm191_vm0 = vcmask 261120   ;;  %vm193_vm1 = vcmask 523264   ;;  %vm195_vm2 = vcmask 785408   ;;  %s235_s21 = scalar_lea.sflag [#allocation3], %s145_s4 }
  0x16   : > { %s151_s25 = scalar_lea.vmem %s578_s0, %s325_s22  ;;  %s155_s28 = scalar_lea.vmem %s579_s1, %s325_s22 }
  0x17   : > { %v156_v2 = vld [vmem:[%s151_s25] sm:$0xff]  ;;  %s391_s22 = scalar_lea.vmem %s250_s8, 256  ;;  %s395_s23 = sshll.u32 %s464_s13, 4  ;;  %s396_s23 = int_to_ptr.vmem [resolvable:$false] %s395_s23 }
  0x18   : > { %170 = vperm.xlu1 %385, %v156_v2   ;;  %165 = vperm.xlu0 %383, %v156_v2   ;;  %v157_v9 = vld [vmem:[%s155_s28] sm:$0xff]  ;;  %p392_p11 = scmp.ne.s32.totalorder %s250_s8, %s391_s22  ;;  %s397_s24 = scalar_lea.vmem %s396_s23, 512 }
  0x19   : > { %p398_p0 = scmp.lt.s32.totalorder %s250_s8, %s396_s23  ;;  %p399_p1 = scmp.lt.s32.totalorder %s397_s24, %s391_s22 }
  0x1a   : > { %p393_p12 = pnand %p392_p11, %p518_p5 }
  0x1b   : > { %p400_p2 = por %p399_p1, %p398_p0 }
  0x1c   : > { %386 = vset.pattern.permute.xlu1 %v455_v3  ;;  %384 = vset.pattern.permute.xlu0 %v456_v4  ;;  %p394_p13 = pneg %p393_p12 }
  0x1d   : > { %209 = vperm.xlu1 %386, %v156_v2   ;;  %204 = vperm.xlu0 %384, %v156_v2  }
  0x1e   : > { %p401_p3 = pnand %p400_p2, %p394_p13 }
  0x21   : > { %387 = vset.pattern.permute.xlu1 %v457_v5  ;;  %388 = vset.pattern.permute.xlu0 %v458_v6 }
  0x22   : > { %175 = vperm.xlu1 %387, %v156_v2   ;;  %214 = vperm.xlu0 %388, %v156_v2  }
  0x26   : > { %389 = vset.pattern.permute.xlu1 %v459_v7 }
  0x27   : > { %160 = vperm.xlu1 %389, %v156_v2  }
  0x2b   : > { %390 = vset.pattern.permute.xlu1 %v460_v8 }
  0x2c   : > { %199 = vperm.xlu1 %390, %v156_v2  }
  0x93   : > { %v166_v10 = vpop.permute.xlu0 %165  ;;  %v171_v11 = vpop.permute.xlu1 %170 }
  0x94   : > { %v168_v12 = vmul.f32 %v166_v10, %v157_v9  ;;  %v173_v13 = vmul.f32 %v171_v11, %v157_v9 }
  0x96   : > { %180 = vrot.lane.b32.xlu0 %v168_v12, %s461_s29 }
  0x98   : > { %v205_v14 = vpop.permute.xlu0 %204  ;;  %v210_v15 = vpop.permute.xlu1 %209 }
  0x99   : > { %v207_v16 = vmul.f32 %v205_v14, %v157_v9  ;;  %v212_v17 = vmul.f32 %v210_v15, %v157_v9 }
  0x9a   : > { %184 = vrot.lane.b32.xlu0 %v173_v13, %s462_s30 }
  0x9b   : > { %219 = vrot.lane.b32.xlu1 %v207_v16, %s461_s29 }
  0x9d   : > { %v176_v18 = vpop.permute.xlu1 %175  ;;  %v215_v19 = vpop.permute.xlu0 %214 }
  0x9e   : > { %v178_v20 = vmul.f32 %v176_v18, %v157_v9  ;;  %v217_v21 = vmul.f32 %v215_v19, %v157_v9 }
  0x9f   : > { %223 = vrot.lane.b32.xlu1 %v212_v17, %s462_s30 }
  0xa0   : > { %188 = vrot.lane.b32.xlu0 %v178_v20, %s463_s3 }
  0xa2   : > { %v161_v22 = vpop.permute.xlu1 %160 }
  0xa3   : > { %227 = vrot.lane.b32.xlu1 %v217_v21, %s463_s3  ;;  %v163_v27 = vmul.f32 %v161_v22, %v157_v9 }
  0xa7   : > { %v200_v23 = vpop.permute.xlu1 %199 }
  0xa8   : > { %v202_v30 = vmul.f32 %v200_v23, %v157_v9 }
 0x108   : > { %v181_v24 = vpop.permute.xlu0 %180 }
 0x109   : > { %v192_v28 = vsel %vm191_vm0, %v163_v27, %v181_v24 }
 0x10c   : > { %v185_v26 = vpop.permute.xlu0 %184 }
 0x10d   : > { %v220_v25 = vpop.permute.xlu1 %219  ;;  %v194_v31 = vsel %vm193_vm1, %v192_v28, %v185_v26 }
 0x10e   : > { %v230_v34 = vsel %vm191_vm0, %v202_v30, %v220_v25 }
 0x111   : > { %v224_v29 = vpop.permute.xlu1 %223 }
 0x112   : > { %v189_v32 = vpop.permute.xlu0 %188  ;;  %v231_v35 = vsel %vm193_vm1, %v230_v34, %v224_v29 }
 0x113   : > { %v196_v33 = vsel %vm195_vm2, %v194_v31, %v189_v32 }
 0x114   : > { %197 = vst [vmem:[%s147_s7] sm:$0xff] %v196_v33 }
 0x115   : > { %v228_v36 = vpop.permute.xlu1 %227 }
 0x116   : > { %v232_v37 = vsel %vm195_vm2, %v231_v35, %v228_v36 }
 0x117   : > { %233 = vst [vmem:[%s147_s7 + $0x8] sm:$0xff] %v232_v37 }
 0x118   : > { %404 = shalt.err (!%p401_p3)
}
 0x119   : > { %s405_s25 = scalar_lea.hbm %s542_s17, 256  ;;  %s409_s28 = scalar_lea.hbm %s580_s2, 512 }
 0x11a   : > { %p406_p4 = scmp.ne.s32.totalorder %s542_s17, %s405_s25  ;;  %p410_p9 = scmp.lt.s32.totalorder %s542_s17, %s580_s2 }
 0x11b   : > { %p411_p10 = scmp.lt.s32.totalorder %s409_s28, %s405_s25 }
 0x11c   : > { %p407_p7 = pnand %p406_p4, %p518_p5 }
 0x11d   : > { %p412_p11 = por %p411_p10, %p410_p9 }
 0x11e   : > { %p408_p8 = pneg %p407_p7 }
 0x120   : > { %p413_p12 = pnand %p412_p11, %p408_p8 }
 0x122   : > { %416 = shalt.err (!%p413_p12)
}
 0x123   : > { %333 = dma.vmem_to_hbm [thread:$0]  (%p518_p5), %s250_s8, 256, %s542_s17, %s235_s21  }
 0x124 PF: > { %p339_p13 = scmp.ge.s32.totalorder %s451_s12, 2  ;;  %s261_s3 = sand.u32 1, %s439_s9  }
 0x125   : > { %s262_s4 = scalar_lea.sflag [#allocation3], %s261_s3 }
 0x126   : > { %p336_p0 = pnand %p339_p13, %p522_p6 }
 0x128   : > { %p337_p1 = pneg %p336_p0 }
 0x12a   : > { %434 = dma.done.wait (%p337_p1), %s262_s4, 256  }
 0x12b   : > { %436 = vsyncadd (%p337_p1), %s262_s4, 4294967040  ;;  %p12_p2 = scmp.ge.s32.totalorder %s505_s15, 4   ;;  %s583_s9 = smov %s443_s10 }
 0x12c   : > { %s584_s10 = smov %s447_s11  ;;  %s585_s11 = smov %s516_s18 }
 0x12d   : > { %s586_s12 = smov %s505_s15  ;;  %14 = sbr.rel (!%p12_p2) target bundleno = 3 (0x3), region = 66 }
 0x132   :  { %267 = vsyncpa [#allocation3], 1 }
 0x133   :  { %269 = vsyncpa [#allocation3 + $0x1], 1 }

</bundles_post_ra>
